<compile_context>
chip_gen: v7x
topology: tpu7x:2x2x1
jax: 0.10.0
libtpu: 0.0.40
codegen_flags: <defaults>
</compile_context>

<pallas_src>
import functools

import jax
import jax.numpy as jnp
from jax.experimental import pallas as pl
from jax.experimental.pallas import tpu as pltpu


def policy_net_kernel(x_ref, w1t_ref, b1_ref, w2_ref, b2_ref, out_ref,
                      m_ref, s_ref, *, batch, block_b):
    """Grid = (phase, batch_tile), tiles innermost.

    phase 0: compute logits for this batch tile and fold them into the running
             per-action (max, sum-of-exp) softmax(dim=0) statistics.
    phase 1: recompute the (cheap) logits and write probs = exp(l - m - log s).
    """
    phase = pl.program_id(0)
    tile = pl.program_id(1)

    # ---- shared per-tile forward pass: both layers on the MXU ----
    x = x_ref[...]                                                        # (block_b, 4)
    h = jnp.dot(x, w1t_ref[...], preferred_element_type=jnp.float32) + b1_ref[...]
    h = jnp.maximum(h, 0.0)                                               # ReLU, (block_b, 64)
    logits = (jnp.dot(h, w2_ref[...], preferred_element_type=jnp.float32)
              + b2_ref[...])                                              # (block_b, 2)

    @pl.when(jnp.logical_and(phase == 0, tile == 0))
    def _init():
        m_ref[...] = jnp.full((1, 2), -jnp.inf, jnp.float32)
        s_ref[...] = jnp.zeros((1, 2), jnp.float32)

    @pl.when(phase == 0)
    def _accumulate():
        lg = logits
        if batch % block_b != 0:
            # Static path, only traced when the batch was padded: padded rows must not
            # contribute to the batch-wise softmax statistics.
            rows = tile * block_b + jax.lax.broadcasted_iota(jnp.int32, logits.shape, 0)
            lg = jnp.where(rows < batch, logits, -jnp.inf)
        m_old = m_ref[...]
        m_new = jnp.maximum(m_old, jnp.max(lg, axis=0, keepdims=True))    # (1, 2)
        s_ref[...] = (jnp.exp(m_old - m_new) * s_ref[...]
                      + jnp.sum(jnp.exp(lg - m_new), axis=0, keepdims=True))
        m_ref[...] = m_new

    @pl.when(phase == 1)
    def _normalize():
        # Exact batch-wise softmax: exp(logit - m - log s) for the whole column.
        shift = m_ref[...] + jnp.log(s_ref[...])                          # (1, 2)
        out_ref[...] = jnp.exp(logits - shift)


def policy_net_forward(x, w1, b1, w2, b2, *, block_b=1024):
    """x: (B, 4) f32, PyTorch convention. Returns (B, 2) probs (softmax over dim=0)."""
    B = x.shape[0]
    block_b = min(block_b, B)
    num_tiles = -(-B // block_b)
    B_pad = num_tiles * block_b
    if B_pad != B:
        x = jnp.pad(x, ((0, B_pad - B), (0, 0)))   # padded rows are masked inside the kernel

    w1t = jnp.transpose(w1)        # (4, 64): tiny one-off (1 KiB), not O(B) layout plumbing
    b1r = b1.reshape(1, 64)
    b2r = b2.reshape(1, 2)

    kernel = functools.partial(policy_net_kernel, batch=B, block_b=block_b)

    out = pl.pallas_call(
        kernel,
        out_shape=jax.ShapeDtypeStruct((B_pad, 2), jnp.float32),
        grid_spec=pltpu.PrefetchScalarGridSpec(
            num_scalar_prefetch=0,
            grid=(2, num_tiles),                                   # (phase, batch tile)
            in_specs=[
                pl.BlockSpec((block_b, 4), lambda p, t: (t, 0)),   # streamed states
                pl.BlockSpec((4, 64), lambda p, t: (0, 0)),        # resident weights/biases
                pl.BlockSpec((1, 64), lambda p, t: (0, 0)),
                pl.BlockSpec((64, 2), lambda p, t: (0, 0)),
                pl.BlockSpec((1, 2), lambda p, t: (0, 0)),
            ],
            # Block index p*t keeps the (unwritten) output block resident during phase 0 and
            # writes each tile exactly once during phase 1 (no garbage write-backs).
            out_specs=pl.BlockSpec((block_b, 2), lambda p, t: (p * t, 0)),
            scratch_shapes=[
                pltpu.VMEM((1, 2), jnp.float32),   # running per-action max
                pltpu.VMEM((1, 2), jnp.float32),   # running per-action sum of exp
            ],
        ),
        compiler_params=pltpu.CompilerParams(
            # Both axes are sequential: the tile axis carries the online-softmax accumulator,
            # the phase axis orders accumulate-then-normalize.
            dimension_semantics=("arbitrary", "arbitrary"),
        ),
    )(x, w1t, b1r, w2, b2r)

    return out[:B] if B_pad != B else out


def init_params(key):
    """PyTorch nn.Linear default init (U[-1/sqrt(fan_in), 1/sqrt(fan_in)])."""
    k1, k2, k3, k4 = jax.random.split(key, 4)
    bound1 = 1.0 / jnp.sqrt(4.0)
    bound2 = 1.0 / jnp.sqrt(64.0)
    w1 = jax.random.uniform(k1, (64, 4), jnp.float32, -bound1, bound1)   # (out, in)
    b1 = jax.random.uniform(k2, (64,), jnp.float32, -bound1, bound1)
    w2 = jax.random.uniform(k3, (64, 2), jnp.float32, -bound2, bound2)   # (in, out)
    b2 = jax.random.uniform(k4, (2,), jnp.float32, -bound2, bound2)
    return w1, b1, w2, b2


def reference_forward(x, w1, b1, w2, b2):
    hi = jax.lax.Precision.HIGHEST
    h = jnp.maximum(jnp.dot(x, w1.T, precision=hi) + b1, 0.0)
    logits = jnp.dot(h, w2, precision=hi) + b2
    return jax.nn.softmax(logits, axis=0)   # dim=0, matching nn.Softmax(dim=0)


if __name__ == "__main__":
    key = jax.random.PRNGKey(0)
    pkey, xkey = jax.random.split(key)
    w1, b1, w2, b2 = init_params(pkey)

    # Batch of CartPole-style 4-dim observations. block_b=128 -> 4 batch tiles, so the
    # multi-tile online softmax(dim=0) accumulation path is actually exercised.
    B = 512
    x = jax.random.normal(xkey, (B, 4), dtype=jnp.float32)

    fwd = jax.jit(functools.partial(policy_net_forward, block_b=128))
    out = jax.block_until_ready(fwd(x, w1, b1, w2, b2))

    ref = reference_forward(x, w1, b1, w2, b2)
    assert out.shape == (B, 2)
    assert jnp.allclose(out, ref, atol=1e-3, rtol=1e-2), "mismatch vs pure-JAX reference"
    # Softmax over dim=0: each action column sums to ~1 (exact normalization, no approx recip).
    assert jnp.allclose(jnp.sum(out, axis=0), jnp.ones((2,)), atol=1e-3)

    print("KERNEL_OK")
</pallas_src>

<mosaic_0001>
module attributes {stable_mosaic.version = 11 : i64} {
  func.func @policy_net_kernel(%arg0: i32, %arg1: i32, %arg2: memref<128x4xf32, #tpu.memory_space<vmem>>, %arg3: memref<4x64xf32, #tpu.memory_space<vmem>>, %arg4: memref<1x64xf32, #tpu.memory_space<vmem>>, %arg5: memref<64x2xf32, #tpu.memory_space<vmem>>, %arg6: memref<1x2xf32, #tpu.memory_space<vmem>>, %arg7: memref<128x2xf32, #tpu.memory_space<vmem>>, %arg8: memref<1x2xf32, #tpu.memory_space<vmem>>, %arg9: memref<1x2xf32, #tpu.memory_space<vmem>>) attributes {dimension_semantics = [#tpu.dimension_semantics<arbitrary>, #tpu.dimension_semantics<arbitrary>], iteration_bounds = array<i64: 2, 4>, scalar_prefetch = 0 : i64, scratch_operands = 2 : i64, tpu.core_type = #tpu.core_type<tc>, window_params = [{transform_indices = @transform_0, window_bounds = array<i64: 128, 4>}, {pipeline_mode = #tpu.pipeline_mode<synchronous>, transform_indices = @transform_1, window_bounds = array<i64: 4, 64>}, {pipeline_mode = #tpu.pipeline_mode<synchronous>, transform_indices = @transform_2, window_bounds = array<i64: 1, 64>}, {pipeline_mode = #tpu.pipeline_mode<synchronous>, transform_indices = @transform_3, window_bounds = array<i64: 64, 2>}, {pipeline_mode = #tpu.pipeline_mode<synchronous>, transform_indices = @transform_4, window_bounds = array<i64: 1, 2>}, {transform_indices = @transform_5, window_bounds = array<i64: 128, 2>}]} {
    %c0 = arith.constant 0 : index
    %c0_0 = arith.constant 0 : index
    %0 = vector.load %arg2[%c0, %c0_0] : memref<128x4xf32, #tpu.memory_space<vmem>>, vector<128x4xf32>
    %c0_1 = arith.constant 0 : index
    %c0_2 = arith.constant 0 : index
    %1 = vector.load %arg3[%c0_1, %c0_2] : memref<4x64xf32, #tpu.memory_space<vmem>>, vector<4x64xf32>
    %cst = arith.constant dense<0.000000e+00> : vector<128x64xf32>
    %2 = tpu.matmul %0, %1, %cst {dimension_numbers = #tpu.dot_dimension_numbers<[1], [0], [0], [1], [0, 0, 1, 1], [], []>} : vector<128x4xf32>, vector<4x64xf32>, vector<128x64xf32> -> vector<128x64xf32>
    %c0_3 = arith.constant 0 : index
    %c0_4 = arith.constant 0 : index
    %3 = vector.load %arg4[%c0_3, %c0_4] : memref<1x64xf32, #tpu.memory_space<vmem>>, vector<1x64xf32>
    %4 = vector.broadcast %3 : vector<1x64xf32> to vector<128x64xf32>
    %5 = arith.addf %2, %4 : vector<128x64xf32>
    %cst_5 = arith.constant 0.000000e+00 : f32
    %6 = vector.broadcast %cst_5 : f32 to vector<128x64xf32>
    %7 = arith.maximumf %5, %6 : vector<128x64xf32>
    %c0_6 = arith.constant 0 : index
    %c0_7 = arith.constant 0 : index
    %8 = vector.load %arg5[%c0_6, %c0_7] : memref<64x2xf32, #tpu.memory_space<vmem>>, vector<64x2xf32>
    %cst_8 = arith.constant dense<0.000000e+00> : vector<128x2xf32>
    %9 = tpu.matmul %7, %8, %cst_8 {dimension_numbers = #tpu.dot_dimension_numbers<[1], [0], [0], [1], [0, 0, 1, 1], [], []>} : vector<128x64xf32>, vector<64x2xf32>, vector<128x2xf32> -> vector<128x2xf32>
    %c0_9 = arith.constant 0 : index
    %c0_10 = arith.constant 0 : index
    %10 = vector.load %arg6[%c0_9, %c0_10] : memref<1x2xf32, #tpu.memory_space<vmem>>, vector<1x2xf32>
    %11 = vector.broadcast %10 : vector<1x2xf32> to vector<128x2xf32>
    %12 = arith.addf %9, %11 : vector<128x2xf32>
    %c0_i32 = arith.constant 0 : i32
    %13 = arith.cmpi eq, %arg0, %c0_i32 : i32
    %c0_i32_11 = arith.constant 0 : i32
    %14 = arith.cmpi eq, %arg1, %c0_i32_11 : i32
    %15 = arith.andi %13, %14 : i1
    %16 = arith.extui %15 : i1 to i32
    %c0_i32_12 = arith.constant 0 : i32
    %17 = arith.cmpi ne, %16, %c0_i32_12 : i32
    scf.if %17 {
      %cst_16 = arith.constant 0xFF800000 : f32
      %24 = vector.broadcast %cst_16 : f32 to vector<1x2xf32>
      %c0_17 = arith.constant 0 : index
      %c0_18 = arith.constant 0 : index
      %25 = vector.load %arg8[%c0_17, %c0_18] : memref<1x2xf32, #tpu.memory_space<vmem>>, vector<1x2xf32>
      tpu.vector_store %arg8[%c0_17, %c0_18], %24 {strides = array<i32>} : memref<1x2xf32, #tpu.memory_space<vmem>>, vector<1x2xf32>,
      %cst_19 = arith.constant 0.000000e+00 : f32
      %26 = vector.broadcast %cst_19 : f32 to vector<1x2xf32>
      %c0_20 = arith.constant 0 : index
      %c0_21 = arith.constant 0 : index
      %27 = vector.load %arg9[%c0_20, %c0_21] : memref<1x2xf32, #tpu.memory_space<vmem>>, vector<1x2xf32>
      tpu.vector_store %arg9[%c0_20, %c0_21], %26 {strides = array<i32>} : memref<1x2xf32, #tpu.memory_space<vmem>>, vector<1x2xf32>,
    } else {
    }
    %c0_i32_13 = arith.constant 0 : i32
    %18 = arith.cmpi eq, %arg0, %c0_i32_13 : i32
    %19 = arith.extui %18 : i1 to i32
    %c0_i32_14 = arith.constant 0 : i32
    %20 = arith.cmpi ne, %19, %c0_i32_14 : i32
    scf.if %20 {
      %c0_16 = arith.constant 0 : index
      %c0_17 = arith.constant 0 : index
      %24 = vector.load %arg8[%c0_16, %c0_17] : memref<1x2xf32, #tpu.memory_space<vmem>>, vector<1x2xf32>
      %cst_18 = arith.constant dense<0xFF800000> : vector<2xf32>
      %25 = vector.multi_reduction <maximumf>, %12, %cst_18 [0] : vector<128x2xf32> to vector<2xf32>
      %26 = vector.shape_cast %25 : vector<2xf32> to vector<1x2xf32>
      %27 = arith.maximumf %24, %26 : vector<1x2xf32>
      %28 = arith.subf %24, %27 : vector<1x2xf32>
      %29 = math.exp %28 : vector<1x2xf32>
      %c0_19 = arith.constant 0 : index
      %c0_20 = arith.constant 0 : index
      %30 = vector.load %arg9[%c0_19, %c0_20] : memref<1x2xf32, #tpu.memory_space<vmem>>, vector<1x2xf32>
      %31 = arith.mulf %29, %30 : vector<1x2xf32>
      %32 = vector.broadcast %27 : vector<1x2xf32> to vector<128x2xf32>
      %33 = arith.subf %12, %32 : vector<128x2xf32>
      %34 = math.exp %33 : vector<128x2xf32>
      %cst_21 = arith.constant dense<0.000000e+00> : vector<2xf32>
      %35 = vector.multi_reduction <add>, %34, %cst_21 [0] : vector<128x2xf32> to vector<2xf32>
      %36 = vector.shape_cast %35 : vector<2xf32> to vector<1x2xf32>
      %37 = arith.addf %31, %36 : vector<1x2xf32>
      %c0_22 = arith.constant 0 : index
      %c0_23 = arith.constant 0 : index
      %38 = vector.load %arg9[%c0_22, %c0_23] : memref<1x2xf32, #tpu.memory_space<vmem>>, vector<1x2xf32>
      tpu.vector_store %arg9[%c0_22, %c0_23], %37 {strides = array<i32>} : memref<1x2xf32, #tpu.memory_space<vmem>>, vector<1x2xf32>,
      %c0_24 = arith.constant 0 : index
      %c0_25 = arith.constant 0 : index
      %39 = vector.load %arg8[%c0_24, %c0_25] : memref<1x2xf32, #tpu.memory_space<vmem>>, vector<1x2xf32>
      tpu.vector_store %arg8[%c0_24, %c0_25], %27 {strides = array<i32>} : memref<1x2xf32, #tpu.memory_space<vmem>>, vector<1x2xf32>,
    } else {
    }
    %c1_i32 = arith.constant 1 : i32
    %21 = arith.cmpi eq, %arg0, %c1_i32 : i32
    %22 = arith.extui %21 : i1 to i32
    %c0_i32_15 = arith.constant 0 : i32
    %23 = arith.cmpi ne, %22, %c0_i32_15 : i32
    scf.if %23 {
      %c0_16 = arith.constant 0 : index
      %c0_17 = arith.constant 0 : index
      %24 = vector.load %arg8[%c0_16, %c0_17] : memref<1x2xf32, #tpu.memory_space<vmem>>, vector<1x2xf32>
      %c0_18 = arith.constant 0 : index
      %c0_19 = arith.constant 0 : index
      %25 = vector.load %arg9[%c0_18, %c0_19] : memref<1x2xf32, #tpu.memory_space<vmem>>, vector<1x2xf32>
      %26 = math.log %25 : vector<1x2xf32>
      %27 = arith.addf %24, %26 : vector<1x2xf32>
      %28 = vector.broadcast %27 : vector<1x2xf32> to vector<128x2xf32>
      %29 = arith.subf %12, %28 : vector<128x2xf32>
      %30 = math.exp %29 : vector<128x2xf32>
      %c0_20 = arith.constant 0 : index
      %c0_21 = arith.constant 0 : index
      %31 = vector.load %arg7[%c0_20, %c0_21] : memref<128x2xf32, #tpu.memory_space<vmem>>, vector<128x2xf32>
      tpu.vector_store %arg7[%c0_20, %c0_21], %30 {strides = array<i32>} : memref<128x2xf32, #tpu.memory_space<vmem>>, vector<128x2xf32>,
    } else {
    }
    return
  }
  func.func @transform_0(%arg0: i32, %arg1: i32) -> (i32, i32) {
    %c0_i32 = arith.constant 0 : i32
    %c0_i32_0 = arith.constant 0 : i32
    return %arg1, %c0_i32 : i32, i32
  }
  func.func @transform_1(%arg0: i32, %arg1: i32) -> (i32, i32) {
    %c0_i32 = arith.constant 0 : i32
    %c0_i32_0 = arith.constant 0 : i32
    %c0_i32_1 = arith.constant 0 : i32
    return %c0_i32, %c0_i32_0 : i32, i32
  }
  func.func @transform_2(%arg0: i32, %arg1: i32) -> (i32, i32) {
    %c0_i32 = arith.constant 0 : i32
    %c0_i32_0 = arith.constant 0 : i32
    %c0_i32_1 = arith.constant 0 : i32
    return %c0_i32, %c0_i32_0 : i32, i32
  }
  func.func @transform_3(%arg0: i32, %arg1: i32) -> (i32, i32) {
    %c0_i32 = arith.constant 0 : i32
    %c0_i32_0 = arith.constant 0 : i32
    %c0_i32_1 = arith.constant 0 : i32
    return %c0_i32, %c0_i32_0 : i32, i32
  }
  func.func @transform_4(%arg0: i32, %arg1: i32) -> (i32, i32) {
    %c0_i32 = arith.constant 0 : i32
    %c0_i32_0 = arith.constant 0 : i32
    %c0_i32_1 = arith.constant 0 : i32
    return %c0_i32, %c0_i32_0 : i32, i32
  }
  func.func @transform_5(%arg0: i32, %arg1: i32) -> (i32, i32) {
    %0 = arith.muli %arg0, %arg1 : i32
    %c0_i32 = arith.constant 0 : i32
    %c0_i32_0 = arith.constant 0 : i32
    return %0, %c0_i32 : i32, i32
  }
}

</mosaic_0001>

<bundles_post_ra>
// kernel: policy_net_forward.1
= control target key start
LH: loop header
LB: loop body
LE: loop exit
PB: predicated region body
PF: predicated region fallthrough
CT: control target
= control target key end

     0   :  { %s1356_s18 = smov 0   ;;  %s1358_s19 = smov 0   ;;  %s1682_s0 = inlined_call_operand.vmem [shape: f32[512,4], index: 0, kind: input, shape index: {}]   ;;  %s1683_s1 = inlined_call_operand.vmem [shape: f32[4,64], index: 1, kind: input, shape index: {}]   ;;  %s1684_s2 = inlined_call_operand.vmem [shape: f32[1,64], index: 2, kind: input, shape index: {}]   ;;  %s1685_s3 = inlined_call_operand.vmem [shape: f32[64,2], index: 3, kind: input, shape index: {}]   ;;  %s1686_s4 = inlined_call_operand.vmem [shape: f32[1,2], index: 4, kind: input, shape index: {}]   ;;  %s1687_s5 = inlined_call_operand.vmem [shape: f32[512,2], index: 5, kind: output, shape index: {}]  }
   0x1   :  { %s1360_s20 = smov 0   ;;  %s1362_s21 = smov 0  }
   0x2   :  { %s1364_s22 = smov 0  }
   0x3 LB: > { %s24_s23 = sadd.s32 1, %s1314_s20  ;;  %s27_s24 = sadd.s32 1, %s1318_s21  ;;  %s1322_s22 = sphi %s1364_s22, %s15_s22   ;;  %s1318_s21 = sphi %s1362_s21, %s1692_s21   ;;  %s1314_s20 = sphi %s1360_s20, %s1691_s20   ;;  %s1310_s19 = sphi %s1358_s19, %s1690_s19   ;;  %s1306_s18 = sphi %s1356_s18, %s1689_s18  }
   0x4   : > { %p25_p0 = scmp.ge.s32.totalorder %s24_s23, 4  ;;  %p999_p1 = scmp.ge.s32.totalorder %s1322_s22, 1 }
   0x5   : > { %p202_p2 = scmp.lt.s32.totalorder %s1322_s22, 9 }
   0x6   : > { %s1694_s23 = smov (%p25_p0, %s24_s23), 0  ;;  %s1696_s24 = smov (!%p25_p0, %s27_s24), %s1318_s21 }
   0x7   : > { %p203_p3 = pnand %p999_p1, %p202_p2  ;;  %p29_p4 = scmp.ge.s32.totalorder %s1696_s24, 2 }
   0x8   : > { %s237_s25 = smul.u32 (!%p203_p3), %s1306_s18, %s1310_s19  ;;  %v261_v0 = vld [vmem:[%s1683_s1] sm:$0xf] (!%p203_p3)  ;;  %vm318_vm0 = vcmask (!%p203_p3), 1043456   ;;  %s1000_s28 = sshll.u32 (!%p203_p3), %s1306_s18, 4  ;;  %v484_v2 = vld [vmem:[%s1685_s3 + $0x8] sm:$0xff] (!%p203_p3)  ;;  %v485_v3 = vld [vmem:[%s1685_s3 + $0x10] sm:$0xff] (!%p203_p3) }
   0x9   : > { %s1698_s24 = smov (%p29_p4, %s1696_s24), 0  ;;  %206 = sbr.rel (%p203_p3) target bundleno = 628 (0x274), region = 40 }
   0xa   : > { %v483_v1 = vld [vmem:[%s1685_s3] sm:$0xff] (!%p203_p3)  ;;  %1084 = vmatprep.subr.msk.mxu0 (!%p203_p3), %vm318_vm0, %v261_v0  ;;  %p232_p5 = scmp.lt.s32.totalorder (!%p203_p3), %s1000_s28, 63  ;;  %v486_v4 = vld [vmem:[%s1685_s3 + $0x18] sm:$0xff] (!%p203_p3)  ;;  %s1002_s12 = sshll.u32 (!%p203_p3), %s237_s25, 4  ;;  %v488_v8 = vld [vmem:[%s1685_s3 + $0x28] sm:$0xff] (!%p203_p3)  ;;  %vm269_vm1 = vcmask (!%p203_p3), 31744  }
   0xb   : > { %1085 = vmatpush3.msk.msra.mxu0 (!%p203_p3), %vm318_vm0, %v261_v0  ;;  %v1150_v5 = vpack.c.bf16 (!%p203_p3), %v484_v2, %v483_v1  ;;  %p239_p6 = scmp.lt.s32.totalorder (!%p203_p3), %s1002_s12, 63  ;;  %v1154_v6 = vpack.c.bf16 (!%p203_p3), %v486_v4, %v485_v3  ;;  %v487_v7 = vld [vmem:[%s1685_s3 + $0x20] sm:$0xff] (!%p203_p3)  ;;  %v489_v26 = vld [vmem:[%s1685_s3 + $0x30] sm:$0xff] (!%p203_p3)  ;;  %v490_v27 = vld [vmem:[%s1685_s3 + $0x38] sm:$0xff] (!%p203_p3)  ;;  %vm498_vm2 = vcmask (!%p203_p3), 523264   ;;  %p692_p7 = scmp.eq.s32.totalorder (!%p203_p3), %s1310_s19, 0 }
   0xc   : > { %v1158_v12 = vpack.c.bf16 (!%p203_p3), %v488_v8, %v487_v7  ;;  %v1162_v28 = vpack.c.bf16 (!%p203_p3), %v490_v27, %v489_v26  ;;  %v1004_v29 = vld [vmem:[%s1684_s2] ss:$0 sm:$0xff] (!%p203_p3)  ;;  %p693_p8 = scmp.eq.s32.totalorder (!%p203_p3), %s1306_s18, 0 }
   0xd   : > { %1151 = vmatprep.subr.bf16.mxu0 (!%p203_p3), %v1150_v5  ;;  %1166 = vmatprep.subr.bf16.mxu1 (!%p203_p3), %v1150_v5 }
   0xe   : > { %1170 = vmatpush3.bf16.msra.mxu1 (!%p203_p3), %v1150_v5  ;;  %p1483_p9 = pnand (!%p203_p3), %p693_p8, %p692_p7 }
   0xf   : > { %1167 = vmatprep.subr.bf16.mxu1 (!%p203_p3), %v1154_v6 }
  0x10   : > { %s1700_s28 = smov (!%p232_p5, %s1000_s28), 63  ;;  %s1702_s12 = smov (!%p239_p6, %s1002_s12), 63 }
  0x11   : > { %s1001_s17 = sshll.u32 %s1700_s28, 3  ;;  %s1003_s25 = sshll.u32 %s1702_s12, 3  ;;  %vm698_vm3 = vcmask (!%p1483_p9), 8192  }
  0x12   : > { %s1417_s29 = scalar_lea.vmem %s1682_s0, %s1001_s17  ;;  %s1422_s7 = scalar_lea.vmem %s1687_s5, %s1003_s25  ;;  %1171 = vmatpush3.bf16.msra.mxu1 %v1154_v6 }
  0x13   : > { %v245_v9 = vld [vmem:[%s1417_s29] sm:$0xff]  ;;  %v246_v10 = vld [vmem:[%s1417_s29 + $0x8] sm:$0xff]  ;;  %v247_v11 = vld [vmem:[%s1417_s29 + $0x10] sm:$0xff]  ;;  %1168 = vmatprep.subr.bf16.mxu1 %v1158_v12 }
  0x14   : > { %1086 = vmatprep.mubr.msk.f32.mxu0 %vm269_vm1, %v245_v9  ;;  %v248_v13 = vld [vmem:[%s1417_s29 + $0x18] sm:$0xff]  ;;  %v249_v14 = vld [vmem:[%s1417_s29 + $0x20] sm:$0xff]  ;;  %v250_v15 = vld [vmem:[%s1417_s29 + $0x28] sm:$0xff] }
  0x15   : > { %1087 = vmatmul.mubr.msk.f32.vlgmr.msra.gmra.mrb[0].mxu0 %vm269_vm1, %v246_v10  ;;  %v251_v16 = vld [vmem:[%s1417_s29 + $0x30] sm:$0xff]  ;;  %v252_v17 = vld [vmem:[%s1417_s29 + $0x38] sm:$0xff]  ;;  %v253_v18 = vld [vmem:[%s1417_s29 + $0x40] sm:$0xff] }
  0x16   : > { %1089 = vmatprep.mubr.msk.f32.mxu0 %vm269_vm1, %v247_v11  ;;  %1153 = vmatpush3.bf16.msra.mxu0 %v1150_v5  ;;  %v254_v19 = vld [vmem:[%s1417_s29 + $0x48] sm:$0xff]  ;;  %v255_v20 = vld [vmem:[%s1417_s29 + $0x50] sm:$0xff]  ;;  %v256_v21 = vld [vmem:[%s1417_s29 + $0x58] sm:$0xff] }
  0x17   : > { %1155 = vmatprep.subr.bf16.mxu0 %v1154_v6  ;;  %1172 = vmatpush3.bf16.msra.mxu1 %v1158_v12  ;;  %v257_v22 = vld [vmem:[%s1417_s29 + $0x60] sm:$0xff]  ;;  %v258_v23 = vld [vmem:[%s1417_s29 + $0x68] sm:$0xff]  ;;  %v259_v24 = vld [vmem:[%s1417_s29 + $0x70] sm:$0xff] }
  0x18   : > { %v260_v25 = vld [vmem:[%s1417_s29 + $0x78] sm:$0xff]  ;;  %1169 = vmatprep.subr.bf16.mxu1 %v1162_v28 }
  0x19   : > { %1090 = vmatmul.mubr.msk.f32.gmra.mrb[2].mxu0 %vm269_vm1, %v248_v13 }
  0x1a   : > { %1092 = vmatprep.mubr.msk.f32.mxu0 %vm269_vm1, %v249_v14  ;;  %1157 = vmatpush3.bf16.msra.mxu0 %v1154_v6  ;;  %v1022_v14 = vld [vmem:[%s1686_s4] ss:$0 sm:$0xff] }
  0x1b   : > { %1159 = vmatprep.subr.bf16.mxu0 %v1158_v12  ;;  %1173 = vmatpush3.bf16.msra.mxu1 %v1162_v28 }
  0x1d   : > { %1093 = vmatmul.mubr.msk.f32.gmra.mrb[4].mxu0 %vm269_vm1, %v250_v15 }
  0x1e   : > { %1095 = vmatprep.mubr.msk.f32.mxu0 %vm269_vm1, %v251_v16  ;;  %1161 = vmatpush3.bf16.msra.mxu0 %v1158_v12 }
  0x1f   : > { %1163 = vmatprep.subr.bf16.mxu0 %v1162_v28 }
  0x21   : > { %1096 = vmatmul.mubr.msk.f32.gmra.mrb[6].mxu0 %vm269_vm1, %v252_v17 }
  0x22   : > { %1098 = vmatprep.mubr.msk.f32.mxu0 %vm269_vm1, %v253_v18  ;;  %1165 = vmatpush3.bf16.msra.mxu0 %v1162_v28 }
  0x25   : > { %1099 = vmatmul.mubr.msk.f32.gmra.mrb[8].mxu0 %vm269_vm1, %v254_v19 }
  0x26   : > { %1101 = vmatprep.mubr.msk.f32.mxu0 %vm269_vm1, %v255_v20 }
  0x29   : > { %1102 = vmatmul.mubr.msk.f32.gmra.mrb[10].mxu0 %vm269_vm1, %v256_v21 }
  0x2a   : > { %1104 = vmatprep.mubr.msk.f32.mxu0 %vm269_vm1, %v257_v22 }
  0x2d   : > { %1105 = vmatmul.mubr.msk.f32.gmra.mrb[12].mxu0 %vm269_vm1, %v258_v23 }
  0x2e   : > { %1107 = vmatprep.mubr.msk.f32.mxu0 %vm269_vm1, %v259_v24 }
  0x31   : > { %1108 = vmatmul.mubr.msk.f32.gmra.mrb[14].mxu0 %vm269_vm1, %v260_v25 }
  0xe8   : > { %v1088_v30 = vpop.f32.mrb[0].mxu0 }
  0xe9   : > { %v394_v31 = vadd.f32 %v1088_v30, %v1004_v29  ;;  %v388_v32 = vpop.f32.mrb[1].mxu0 }
  0xea   : > { %v389_v33 = vadd.f32 %v1004_v29, %v388_v32 }
  0xeb   : > { %v468_v36 = vmax.f32 %v394_v31, 0.0 }
  0xec   : > { %v467_v34 = vmax.f32 %v389_v33, 0.0  ;;  %v1091_v35 = vpop.f32.mrb[2].mxu0 }
  0xed   : > { %v404_v37 = vadd.f32 %v1091_v35, %v1004_v29  ;;  %v398_v38 = vpop.f32.mrb[3].mxu0 }
  0xee   : > { %v399_v39 = vadd.f32 %v1004_v29, %v398_v38  ;;  %1126 = vmatprep.mubr.msk.f32.mxu0 %vm498_vm2, %v467_v34 }
  0xef   : > { %1127 = vmatmul.mubr.msk.f32.vlgmr.msra.gmra.mrb[16].mxu0 %vm498_vm2, %v468_v36  ;;  %v470_v42 = vmax.f32 %v404_v37, 0.0 }
  0xf0   : > { %v469_v40 = vmax.f32 %v399_v39, 0.0  ;;  %v1094_v41 = vpop.f32.mrb[4].mxu0 }
  0xf1   : > { %v414_v43 = vadd.f32 %v1094_v41, %v1004_v29  ;;  %v408_v44 = vpop.f32.mrb[5].mxu0 }
  0xf2   : > { %v409_v45 = vadd.f32 %v1004_v29, %v408_v44  ;;  %1129 = vmatprep.mubr.msk.f32.mxu1 %vm498_vm2, %v469_v40 }
  0xf3   : > { %1130 = vmatmul.mubr.msk.f32.vlgmr.msra.gmra.mrb[0].mxu1 %vm498_vm2, %v470_v42  ;;  %v472_v48 = vmax.f32 %v414_v43, 0.0 }
  0xf4   : > { %v471_v46 = vmax.f32 %v409_v45, 0.0  ;;  %v1097_v47 = vpop.f32.mrb[6].mxu0 }
  0xf5   : > { %v424_v49 = vadd.f32 %v1097_v47, %v1004_v29  ;;  %v418_v50 = vpop.f32.mrb[7].mxu0  ;;  %v1324_v47 = vmov (!%p1483_p9), -inf  }
  0xf6   : > { %v419_v51 = vadd.f32 %v1004_v29, %v418_v50  ;;  %1132 = vmatprep.mubr.msk.f32.mxu1 %vm498_vm2, %v471_v46  ;;  %699 = vst.msk [vmem:[#allocation2] sm:$0x1] (!%p1483_p9), %vm698_vm3, %v1324_v47 }
  0xf7   : > { %1133 = vmatmul.mubr.msk.f32.gmra.mrb[2].mxu1 %vm498_vm2, %v472_v48  ;;  %v474_v54 = vmax.f32 %v424_v49, 0.0  ;;  %v1325_v48 = vmov (!%p1483_p9), 0.0  }
  0xf8   : > { %v473_v52 = vmax.f32 %v419_v51, 0.0  ;;  %v1100_v53 = vpop.f32.mrb[8].mxu0  ;;  %700 = vst.msk [vmem:[#allocation3] sm:$0x1] (!%p1483_p9), %vm698_vm3, %v1325_v48 }
  0xf9   : > { %v434_v55 = vadd.f32 %v1100_v53, %v1004_v29  ;;  %v428_v56 = vpop.f32.mrb[9].mxu0 }
  0xfa   : > { %v429_v57 = vadd.f32 %v1004_v29, %v428_v56  ;;  %1135 = vmatprep.mubr.msk.f32.mxu1 %vm498_vm2, %v473_v52 }
  0xfb   : > { %1136 = vmatmul.mubr.msk.f32.gmra.mrb[4].mxu1 %vm498_vm2, %v474_v54  ;;  %v476_v60 = vmax.f32 %v434_v55, 0.0 }
  0xfc   : > { %v475_v58 = vmax.f32 %v429_v57, 0.0  ;;  %v1103_v59 = vpop.f32.mrb[10].mxu0 }
  0xfd   : > { %v444_v61 = vadd.f32 %v1103_v59, %v1004_v29  ;;  %v438_v62 = vpop.f32.mrb[11].mxu0 }
  0xfe   : > { %v439_v63 = vadd.f32 %v1004_v29, %v438_v62  ;;  %1138 = vmatprep.mubr.msk.f32.mxu1 %vm498_vm2, %v475_v58 }
  0xff   : > { %1139 = vmatmul.mubr.msk.f32.gmra.mrb[6].mxu1 %vm498_vm2, %v476_v60  ;;  %v478_v2 = vmax.f32 %v444_v61, 0.0 }
 0x100   : > { %v477_v0 = vmax.f32 %v439_v63, 0.0  ;;  %v1106_v1 = vpop.f32.mrb[12].mxu0 }
 0x101   : > { %v454_v3 = vadd.f32 %v1106_v1, %v1004_v29  ;;  %v448_v4 = vpop.f32.mrb[13].mxu0 }
 0x102   : > { %v449_v5 = vadd.f32 %v1004_v29, %v448_v4  ;;  %1141 = vmatprep.mubr.msk.f32.mxu1 %vm498_vm2, %v477_v0 }
 0x103   : > { %1142 = vmatmul.mubr.msk.f32.gmra.mrb[8].mxu1 %vm498_vm2, %v478_v2  ;;  %v480_v8 = vmax.f32 %v454_v3, 0.0 }
 0x104   : > { %v479_v6 = vmax.f32 %v449_v5, 0.0  ;;  %v1109_v7 = vpop.f32.mrb[14].mxu0 }
 0x105   : > { %v464_v9 = vadd.f32 %v1109_v7, %v1004_v29  ;;  %v458_v10 = vpop.f32.mrb[15].mxu0 }
 0x106   : > { %v459_v11 = vadd.f32 %v1004_v29, %v458_v10  ;;  %1144 = vmatprep.mubr.msk.f32.mxu1 %vm498_vm2, %v479_v6 }
 0x107   : > { %1145 = vmatmul.mubr.msk.f32.gmra.mrb[10].mxu1 %vm498_vm2, %v480_v8  ;;  %v482_v13 = vmax.f32 %v464_v9, 0.0 }
 0x108   : > { %v481_v12 = vmax.f32 %v459_v11, 0.0 }
 0x10a   : > { %1147 = vmatprep.mubr.msk.f32.mxu1 %vm498_vm2, %v481_v12 }
 0x10b   : > { %1148 = vmatmul.mubr.msk.f32.gmra.mrb[12].mxu1 %vm498_vm2, %v482_v13 }
 0x1c2   : > { %v1128_v15 = vpop.f32.mrb[16].mxu0 }
 0x1c3   : > { %v1490_v16 = vadd.f32 %v1128_v15, %v1022_v14  ;;  %v613_v17 = vpop.f32.mrb[17].mxu0 }
 0x1c4   : > { %v1492_v18 = vadd.f32 %v1022_v14, %v613_v17 }
 0x1c6   : > { %v1131_v19 = vpop.f32.mrb[0].mxu1 }
 0x1c7   : > { %v1494_v20 = vadd.f32 %v1131_v19, %v1022_v14  ;;  %v623_v21 = vpop.f32.mrb[1].mxu1 }
 0x1c8   : > { %v1496_v22 = vadd.f32 %v1022_v14, %v623_v21 }
 0x1ca   : > { %v1134_v23 = vpop.f32.mrb[2].mxu1 }
 0x1cb   : > { %v1498_v24 = vadd.f32 %v1134_v23, %v1022_v14  ;;  %v633_v25 = vpop.f32.mrb[3].mxu1 }
 0x1cc   : > { %v1500_v26 = vadd.f32 %v1022_v14, %v633_v25 }
 0x1ce   : > { %v1137_v27 = vpop.f32.mrb[4].mxu1 }
 0x1cf   : > { %v1502_v28 = vadd.f32 %v1137_v27, %v1022_v14  ;;  %v643_v29 = vpop.f32.mrb[5].mxu1 }
 0x1d0   : > { %v1504_v30 = vadd.f32 %v1022_v14, %v643_v29 }
 0x1d2   : > { %v1140_v31 = vpop.f32.mrb[6].mxu1 }
 0x1d3   : > { %v1506_v32 = vadd.f32 %v1140_v31, %v1022_v14  ;;  %v653_v33 = vpop.f32.mrb[7].mxu1 }
 0x1d4   : > { %v1508_v34 = vadd.f32 %v1022_v14, %v653_v33 }
 0x1d6   : > { %v1143_v35 = vpop.f32.mrb[8].mxu1 }
 0x1d7   : > { %v1510_v36 = vadd.f32 %v1143_v35, %v1022_v14  ;;  %v663_v37 = vpop.f32.mrb[9].mxu1 }
 0x1d8   : > { %v1512_v38 = vadd.f32 %v1022_v14, %v663_v37 }
 0x1da   : > { %v1146_v39 = vpop.f32.mrb[10].mxu1  ;;  %697 = sbr.rel (%p1483_p9) target bundleno = 481 (0x1e1), region = 44 }
 0x1db   : > { %v1514_v40 = vadd.f32 %v1146_v39, %v1022_v14  ;;  %v673_v41 = vpop.f32.mrb[11].mxu1 }
 0x1dc   : > { %v1516_v42 = vadd.f32 %v1022_v14, %v673_v41 }
 0x1de   : > { %v1149_v43 = vpop.f32.mrb[12].mxu1 }
 0x1df   : > { %v1518_v44 = vadd.f32 %v1149_v43, %v1022_v14  ;;  %v683_v45 = vpop.f32.mrb[13].mxu1 }
 0x1e0   : > { %v1520_v46 = vadd.f32 %v1022_v14, %v683_v45 }
 0x1e1 PF: > { %p1039_p10 = scmp.ne.s32.totalorder %s1310_s19, 0 }
 0x1e2   : > { %vm705_vm4 = vcmask (!%p1039_p10), 15360   ;;  %v750_v21 = vlaneseq (!%p1039_p10)  ;;  %v1557_v31 = vld [vmem:[#allocation2] sm:$0x1] (!%p1039_p10)  ;;  %vm841_vm5 = vcmask (!%p1039_p10), 8192  }
 0x1e3   : > { %703 = sbr.rel (%p1039_p10) target bundleno = 573 (0x23d), region = 48  ;;  %v706_v49 = vsel (!%p1039_p10), %vm705_vm4, %v1492_v18, -inf  ;;  %v707_v50 = vsel (!%p1039_p10), %vm705_vm4, %v1490_v16, -inf  ;;  %v708_v51 = vsel (!%p1039_p10), %vm705_vm4, %v1496_v22, -inf  ;;  %v709_v52 = vsel (!%p1039_p10), %vm705_vm4, %v1494_v20, -inf }
 0x1e4   : > { %v710_v53 = vsel (!%p1039_p10), %vm705_vm4, %v1500_v26, -inf  ;;  %v712_v54 = vsel (!%p1039_p10), %vm705_vm4, %v1498_v24, -inf  ;;  %v714_v55 = vsel (!%p1039_p10), %vm705_vm4, %v1504_v30, -inf  ;;  %v716_v56 = vsel (!%p1039_p10), %vm705_vm4, %v1502_v28, -inf }
 0x1e5   : > { %v711_v57 = vmax.f32 (!%p1039_p10), %v706_v49, %v710_v53  ;;  %v713_v58 = vmax.f32 (!%p1039_p10), %v707_v50, %v712_v54  ;;  %v715_v59 = vmax.f32 (!%p1039_p10), %v708_v51, %v714_v55  ;;  %v717_v60 = vmax.f32 (!%p1039_p10), %v709_v52, %v716_v56 }
 0x1e6   : > { %v718_v61 = vsel (!%p1039_p10), %vm705_vm4, %v1508_v34, -inf  ;;  %v720_v62 = vsel (!%p1039_p10), %vm705_vm4, %v1506_v32, -inf  ;;  %v722_v63 = vsel (!%p1039_p10), %vm705_vm4, %v1512_v38, -inf  ;;  %v724_v0 = vsel (!%p1039_p10), %vm705_vm4, %v1510_v36, -inf }
 0x1e7   : > { %v719_v1 = vmax.f32 (!%p1039_p10), %v711_v57, %v718_v61  ;;  %v721_v2 = vmax.f32 (!%p1039_p10), %v713_v58, %v720_v62  ;;  %v723_v3 = vmax.f32 (!%p1039_p10), %v715_v59, %v722_v63  ;;  %v725_v4 = vmax.f32 (!%p1039_p10), %v717_v60, %v724_v0 }
 0x1e8   : > { %v726_v5 = vsel (!%p1039_p10), %vm705_vm4, %v1516_v42, -inf  ;;  %v728_v6 = vsel (!%p1039_p10), %vm705_vm4, %v1514_v40, -inf  ;;  %v730_v7 = vsel (!%p1039_p10), %vm705_vm4, %v1520_v46, -inf  ;;  %v732_v8 = vsel (!%p1039_p10), %vm705_vm4, %v1518_v44, -inf }
 0x1e9   : > { %v727_v9 = vmax.f32 (!%p1039_p10), %v719_v1, %v726_v5  ;;  %v729_v10 = vmax.f32 (!%p1039_p10), %v721_v2, %v728_v6  ;;  %v731_v11 = vmax.f32 (!%p1039_p10), %v723_v3, %v730_v7  ;;  %v733_v12 = vmax.f32 (!%p1039_p10), %v725_v4, %v732_v8 }
 0x1ea   : > { %v751_v27 = vshrl.u32 %v750_v21, 7 }
 0x1eb   : > { %v734_v13 = vmax.f32 %v727_v9, %v729_v10  ;;  %v735_v14 = vmax.f32 %v731_v11, %v733_v12 }
 0x1ec   : > { %v752_v35 = vsub.s32 0, %v751_v27 }
 0x1ed   : > { %v736_v15 = vmax.f32 %v734_v13, %v735_v14 }
 0x1ef   : > { %v737_v17 = vrot.slane %v736_v15, 4 }
 0x1f1   : > { %v738_v19 = vmax.f32 %v736_v15, %v737_v17 }
 0x1f3   : > { %v739_v23 = vrot.slane %v738_v19, 2 }
 0x1f5   : > { %v740_v25 = vmax.f32 %v738_v19, %v739_v23 }
 0x1f7   : > { %v741_v29 = vrot.slane %v740_v25, 1 }
 0x1f9   : > { %v742_v33 = vmax.f32 %v740_v25, %v741_v29 }
 0x1fb   : > { %v1560_v37 = vmax.f32 %v1557_v31, %v742_v33 }
 0x1fd   : > { %v1563_v39 = vrot.slane %v1560_v37, %v752_v35  ;;  %843 = vst.msk [vmem:[#allocation2] sm:$0x1] %vm841_vm5, %v1560_v37 }
 0x1ff   : > { %v755_v41 = vsub.f32 %v1492_v18, %v1563_v39  ;;  %v756_v43 = vsub.f32 %v1490_v16, %v1563_v39  ;;  %v757_v45 = vsub.f32 %v1496_v22, %v1563_v39  ;;  %v758_v47 = vsub.f32 %v1494_v20, %v1563_v39 }
 0x200   : > { %v759_v48 = vsub.f32 %v1500_v26, %v1563_v39  ;;  %v760_v49 = vsub.f32 %v1498_v24, %v1563_v39  ;;  %v761_v52 = vsub.f32 %v1504_v30, %v1563_v39  ;;  %v762_v56 = vsub.f32 %v1502_v28, %v1563_v39 }
 0x201   : > { %v771_v50 = vmul.f32 1.442695, %v755_v41  ;;  %v773_v51 = vmul.f32 1.442695, %v756_v43  ;;  %v775_v53 = vmul.f32 1.442695, %v757_v45  ;;  %v763_v58 = vsub.f32 %v1508_v34, %v1563_v39 }
 0x202   : > { %v777_v54 = vmul.f32 1.442695, %v758_v47  ;;  %v779_v55 = vmul.f32 1.442695, %v759_v48  ;;  %v781_v57 = vmul.f32 1.442695, %v760_v49  ;;  %v764_v60 = vsub.f32 %v1506_v32, %v1563_v39 }
 0x203   : > { %1216 = vpow2.f32 %v771_v50  ;;  %v783_v59 = vmul.f32 1.442695, %v761_v52  ;;  %v785_v61 = vmul.f32 1.442695, %v762_v56  ;;  %v765_v62 = vsub.f32 %v1512_v38, %v1563_v39 }
 0x204   : > { %1218 = vpow2.f32 %v773_v51  ;;  %v787_v63 = vmul.f32 1.442695, %v763_v58  ;;  %v766_v0 = vsub.f32 %v1510_v36, %v1563_v39  ;;  %v789_v1 = vmul.f32 1.442695, %v764_v60 }
 0x205   : > { %1220 = vpow2.f32 %v775_v53  ;;  %v767_v4 = vsub.f32 %v1516_v42, %v1563_v39  ;;  %v791_v5 = vmul.f32 1.442695, %v765_v62  ;;  %v768_v8 = vsub.f32 %v1514_v40, %v1563_v39 }
 0x206   : > { %1222 = vpow2.f32 %v777_v54  ;;  %v793_v11 = vmul.f32 1.442695, %v766_v0  ;;  %v769_v19 = vsub.f32 %v1520_v46, %v1563_v39  ;;  %v770_v29 = vsub.f32 %v1518_v44, %v1563_v39 }
 0x207   : > { %1224 = vpow2.f32 %v779_v55  ;;  %v795_v21 = vmul.f32 1.442695, %v767_v4  ;;  %v797_v33 = vmul.f32 1.442695, %v768_v8 }
 0x208   : > { %1226 = vpow2.f32 %v781_v57  ;;  %v799_v45 = vmul.f32 1.442695, %v769_v19  ;;  %v801_v50 = vmul.f32 1.442695, %v770_v29  ;;  %v747_v19 = vld [vmem:[#allocation3] sm:$0x1] }
 0x209   : > { %1228 = vpow2.f32 %v783_v59 }
 0x20a   : > { %1230 = vpow2.f32 %v785_v61 }
 0x20b   : > { %1232 = vpow2.f32 %v787_v63  ;;  %v744_v63 = vsub.f32 %v1557_v31, %v1560_v37 }
 0x20c   : > { %1234 = vpow2.f32 %v789_v1 }
 0x20d   : > { %v1217_v2 = vpop.eup %1216  ;;  %1236 = vpow2.f32 %v791_v5 }
 0x20e   : > { %v1219_v3 = vpop.eup %1218  ;;  %v803_v6 = vsel %vm705_vm4, %v1217_v2, 0.0  ;;  %1238 = vpow2.f32 %v793_v11 }
 0x20f   : > { %v1221_v7 = vpop.eup %1220  ;;  %v804_v9 = vsel %vm705_vm4, %v1219_v3, 0.0  ;;  %1240 = vpow2.f32 %v795_v21 }
 0x210   : > { %v1223_v10 = vpop.eup %1222  ;;  %v805_v12 = vadd.f32 %v804_v9, %v803_v6  ;;  %v806_v13 = vsel %vm705_vm4, %v1221_v7, 0.0  ;;  %1242 = vpow2.f32 %v797_v33  ;;  %v745_v6 = vmul.f32 1.442695, %v744_v63 }
 0x211   : > { %v1225_v14 = vpop.eup %1224  ;;  %v808_v15 = vsel %vm705_vm4, %v1223_v10, 0.0  ;;  %1244 = vpow2.f32 %v799_v45 }
 0x212   : > { %v1227_v17 = vpop.eup %1226  ;;  %v807_v23 = vadd.f32 %v806_v13, %v805_v12  ;;  %v810_v25 = vsel %vm705_vm4, %v1225_v14, 0.0  ;;  %1246 = vpow2.f32 %v801_v50 }
 0x213   : > { %v1229_v27 = vpop.eup %1228  ;;  %v812_v41 = vsel %vm705_vm4, %v1227_v17, 0.0  ;;  %1248 = vpow2.f32 %v745_v6 }
 0x214   : > { %v809_v35 = vadd.f32 %v808_v15, %v807_v23  ;;  %v1231_v43 = vpop.eup %1230  ;;  %v814_v48 = vsel %vm705_vm4, %v1229_v27, 0.0 }
 0x215   : > { %v1233_v49 = vpop.eup %1232  ;;  %v816_v52 = vsel %vm705_vm4, %v1231_v43, 0.0 }
 0x216   : > { %v811_v47 = vadd.f32 %v810_v25, %v809_v35  ;;  %v1235_v53 = vpop.eup %1234  ;;  %v818_v54 = vsel %vm705_vm4, %v1233_v49, 0.0 }
 0x217   : > { %v1237_v55 = vpop.eup %1236  ;;  %v820_v57 = vsel %vm705_vm4, %v1235_v53, 0.0 }
 0x218   : > { %v813_v51 = vadd.f32 %v812_v41, %v811_v47  ;;  %v1239_v58 = vpop.eup %1238  ;;  %v822_v60 = vsel %vm705_vm4, %v1237_v55, 0.0 }
 0x219   : > { %v1241_v61 = vpop.eup %1240  ;;  %v824_v0 = vsel %vm705_vm4, %v1239_v58, 0.0 }
 0x21a   : > { %v815_v39 = vadd.f32 %v814_v48, %v813_v51  ;;  %v1243_v1 = vpop.eup %1242  ;;  %v826_v3 = vsel %vm705_vm4, %v1241_v61, 0.0 }
 0x21b   : > { %v1245_v4 = vpop.eup %1244  ;;  %v828_v7 = vsel %vm705_vm4, %v1243_v1, 0.0 }
 0x21c   : > { %v817_v56 = vadd.f32 %v816_v52, %v815_v39  ;;  %v1247_v8 = vpop.eup %1246  ;;  %v830_v10 = vsel %vm705_vm4, %v1245_v4, 0.0 }
 0x21d   : > { %v832_v12 = vsel %vm705_vm4, %v1247_v8, 0.0  ;;  %v1249_v17 = vpop.eup %1248 }
 0x21e   : > { %v819_v59 = vadd.f32 %v818_v54, %v817_v56  ;;  %v748_v23 = vmul.f32 %v1249_v17, %v747_v19 }
 0x220   : > { %v821_v62 = vadd.f32 %v820_v57, %v819_v59 }
 0x222   : > { %v823_v2 = vadd.f32 %v822_v60, %v821_v62 }
 0x224   : > { %v825_v5 = vadd.f32 %v824_v0, %v823_v2 }
 0x226   : > { %v827_v9 = vadd.f32 %v826_v3, %v825_v5 }
 0x228   : > { %v829_v11 = vadd.f32 %v828_v7, %v827_v9 }
 0x22a   : > { %v831_v31 = vadd.f32 %v830_v10, %v829_v11 }
 0x22c   : > { %v833_v37 = vadd.f32 %v832_v12, %v831_v31 }
 0x22e   : > { %v834_v13 = vrot.slane %v833_v37, 4 }
 0x230   : > { %v835_v14 = vadd.f32 %v834_v13, %v833_v37 }
 0x232   : > { %v836_v15 = vrot.slane %v835_v14, 2 }
 0x234   : > { %v837_v21 = vadd.f32 %v836_v15, %v835_v14 }
 0x236   : > { %v838_v25 = vrot.slane %v837_v21, 1 }
 0x238   : > { %v839_v27 = vadd.f32 %v838_v25, %v837_v21 }
 0x23a   : > { %v840_v29 = vadd.f32 %v839_v27, %v748_v23 }
 0x23c   : > { %842 = vst.msk [vmem:[#allocation3] sm:$0x1] %vm841_vm5, %v840_v29 }
 0x23d PF: > { %p1040_p11 = scmp.ne.s32.totalorder %s1310_s19, 1 }
 0x23e   : > { %v854_v35 = vlaneseq (!%p1040_p11)  ;;  %v848_v45 = vld [vmem:[#allocation2] sm:$0x1] (!%p1040_p11)  ;;  %vm907_vm6 = vcmask (!%p1040_p11), 15360  }
 0x23f   : > { %847 = sbr.rel (%p1040_p11) target bundleno = 628 (0x274), region = 52 }
 0x240   : > { %v855_v41 = vshrl.u32 (!%p1040_p11), %v854_v35, 7 }
 0x242   : > { %v856_v48 = vsub.s32 (!%p1040_p11), 0, %v855_v41 }
 0x243   : > { %v849_v33 = vld [vmem:[#allocation3] sm:$0x1] (!%p1040_p11) }
 0x244   : > { %1250 = vlog2.f32 (!%p1040_p11), %v849_v33 }
 0x24e   : > { %v1251_v43 = vpop.eup %1250 }
 0x24f   : > { %v851_v47 = vmul.f32 0.6931472, %v1251_v43 }
 0x251   : > { %v852_v49 = vadd.f32 %v851_v47, %v848_v45 }
 0x253   : > { %v857_v50 = vrot.slane %v852_v49, %v856_v48 }
 0x255   : > { %v859_v51 = vsub.f32 %v1492_v18, %v857_v50  ;;  %v860_v52 = vsub.f32 %v1490_v16, %v857_v50  ;;  %v861_v53 = vsub.f32 %v1496_v22, %v857_v50  ;;  %v862_v39 = vsub.f32 %v1494_v20, %v857_v50 }
 0x256   : > { %v863_v54 = vsub.f32 %v1500_v26, %v857_v50  ;;  %v864_v55 = vsub.f32 %v1498_v24, %v857_v50  ;;  %v865_v59 = vsub.f32 %v1504_v30, %v857_v50  ;;  %v866_v61 = vsub.f32 %v1502_v28, %v857_v50 }
 0x257   : > { %v875_v56 = vmul.f32 1.442695, %v859_v51  ;;  %v877_v57 = vmul.f32 1.442695, %v860_v52  ;;  %v879_v58 = vmul.f32 1.442695, %v861_v53  ;;  %v867_v16 = vsub.f32 %v1508_v34, %v857_v50 }
 0x258   : > { %v881_v60 = vmul.f32 1.442695, %v862_v39  ;;  %v883_v18 = vmul.f32 1.442695, %v863_v54  ;;  %v885_v22 = vmul.f32 1.442695, %v864_v55  ;;  %v868_v20 = vsub.f32 %v1506_v32, %v857_v50 }
 0x259   : > { %1252 = vpow2.f32 %v875_v56  ;;  %v887_v26 = vmul.f32 1.442695, %v865_v59  ;;  %v869_v24 = vsub.f32 %v1512_v38, %v857_v50  ;;  %v889_v62 = vmul.f32 1.442695, %v866_v61 }
 0x25a   : > { %1254 = vpow2.f32 %v877_v57  ;;  %v870_v63 = vsub.f32 %v1510_v36, %v857_v50  ;;  %v891_v30 = vmul.f32 1.442695, %v867_v16  ;;  %v871_v28 = vsub.f32 %v1516_v42, %v857_v50 }
 0x25b   : > { %1256 = vpow2.f32 %v879_v58  ;;  %v893_v0 = vmul.f32 1.442695, %v868_v20  ;;  %v872_v34 = vsub.f32 %v1514_v40, %v857_v50  ;;  %v895_v1 = vmul.f32 1.442695, %v869_v24 }
 0x25c   : > { %1258 = vpow2.f32 %v881_v60  ;;  %v873_v32 = vsub.f32 %v1520_v46, %v857_v50  ;;  %v897_v38 = vmul.f32 1.442695, %v870_v63  ;;  %v874_v2 = vsub.f32 %v1518_v44, %v857_v50 }
 0x25d   : > { %1260 = vpow2.f32 %v883_v18  ;;  %v899_v36 = vmul.f32 1.442695, %v871_v28  ;;  %v901_v42 = vmul.f32 1.442695, %v872_v34 }
 0x25e   : > { %1262 = vpow2.f32 %v885_v22  ;;  %v903_v40 = vmul.f32 1.442695, %v873_v32  ;;  %v905_v46 = vmul.f32 1.442695, %v874_v2 }
 0x25f   : > { %1264 = vpow2.f32 %v887_v26 }
 0x260   : > { %1266 = vpow2.f32 %v889_v62 }
 0x261   : > { %1268 = vpow2.f32 %v891_v30 }
 0x262   : > { %1270 = vpow2.f32 %v893_v0 }
 0x263   : > { %v1253_v3 = vpop.eup %1252  ;;  %1272 = vpow2.f32 %v895_v1 }
 0x264   : > { %v1255_v4 = vpop.eup %1254  ;;  %908 = vst.msk [vmem:[%s1422_s7] sm:$0xff] %vm907_vm6, %v1253_v3  ;;  %1274 = vpow2.f32 %v897_v38 }
 0x265   : > { %v1257_v5 = vpop.eup %1256  ;;  %909 = vst.msk [vmem:[%s1422_s7 + $0x8] sm:$0xff] %vm907_vm6, %v1255_v4  ;;  %1276 = vpow2.f32 %v899_v36 }
 0x266   : > { %v1259_v44 = vpop.eup %1258  ;;  %910 = vst.msk [vmem:[%s1422_s7 + $0x10] sm:$0xff] %vm907_vm6, %v1257_v5  ;;  %1278 = vpow2.f32 %v901_v42 }
 0x267   : > { %v1261_v6 = vpop.eup %1260  ;;  %911 = vst.msk [vmem:[%s1422_s7 + $0x18] sm:$0xff] %vm907_vm6, %v1259_v44  ;;  %1280 = vpow2.f32 %v903_v40 }
 0x268   : > { %v1263_v7 = vpop.eup %1262  ;;  %912 = vst.msk [vmem:[%s1422_s7 + $0x20] sm:$0xff] %vm907_vm6, %v1261_v6  ;;  %1282 = vpow2.f32 %v905_v46 }
 0x269   : > { %v1265_v8 = vpop.eup %1264  ;;  %913 = vst.msk [vmem:[%s1422_s7 + $0x28] sm:$0xff] %vm907_vm6, %v1263_v7 }
 0x26a   : > { %v1267_v9 = vpop.eup %1266  ;;  %914 = vst.msk [vmem:[%s1422_s7 + $0x30] sm:$0xff] %vm907_vm6, %v1265_v8 }
 0x26b   : > { %v1269_v10 = vpop.eup %1268  ;;  %915 = vst.msk [vmem:[%s1422_s7 + $0x38] sm:$0xff] %vm907_vm6, %v1267_v9 }
 0x26c   : > { %v1271_v11 = vpop.eup %1270  ;;  %916 = vst.msk [vmem:[%s1422_s7 + $0x40] sm:$0xff] %vm907_vm6, %v1269_v10 }
 0x26d   : > { %v1273_v12 = vpop.eup %1272  ;;  %917 = vst.msk [vmem:[%s1422_s7 + $0x48] sm:$0xff] %vm907_vm6, %v1271_v11 }
 0x26e   : > { %v1275_v31 = vpop.eup %1274  ;;  %918 = vst.msk [vmem:[%s1422_s7 + $0x50] sm:$0xff] %vm907_vm6, %v1273_v12 }
 0x26f   : > { %v1277_v37 = vpop.eup %1276  ;;  %919 = vst.msk [vmem:[%s1422_s7 + $0x58] sm:$0xff] %vm907_vm6, %v1275_v31 }
 0x270   : > { %v1279_v13 = vpop.eup %1278  ;;  %920 = vst.msk [vmem:[%s1422_s7 + $0x60] sm:$0xff] %vm907_vm6, %v1277_v37 }
 0x271   : > { %v1281_v14 = vpop.eup %1280  ;;  %921 = vst.msk [vmem:[%s1422_s7 + $0x68] sm:$0xff] %vm907_vm6, %v1279_v13 }
 0x272   : > { %v1283_v15 = vpop.eup %1282  ;;  %922 = vst.msk [vmem:[%s1422_s7 + $0x70] sm:$0xff] %vm907_vm6, %v1281_v14 }
 0x273   : > { %923 = vst.msk [vmem:[%s1422_s7 + $0x78] sm:$0xff] %vm907_vm6, %v1283_v15 }
 0x274 PF: > { %s15_s22 = sadd.s32 1, %s1322_s22   ;;  %s1689_s18 = smov %s1314_s20 }
 0x275   : > { %p12_p12 = scmp.ge.s32.totalorder %s15_s22, 10   ;;  %s1690_s19 = smov %s1318_s21 }
 0x276   : > { %s1691_s20 = smov %s1694_s23  ;;  %s1692_s21 = smov %s1698_s24 }
 0x277   :  { %14 = sbr.rel (!%p12_p12) target bundleno = 3 (0x3), region = 82 }

</bundles_post_ra>
